<compile_context>
chip_gen: v6e
topology: v6e:2x2x1
jax: 0.10.0
libtpu: 0.0.40
codegen_flags: <defaults>
</compile_context>

<pallas_src>
import functools

import jax
import jax.numpy as jnp
from jax import lax
from jax.experimental import pallas as pl
from jax.experimental.pallas import tpu as pltpu

_LANES_MAX = 1024       # lane width per block (multiple of 128)
_TILE_M_MAX = 256       # max sublane rows per block -> 4 MiB/step in f32
_ROW_QUANTUM = 16       # row granularity: satisfies f32 (8,128) and bf16 (16,128)
_MIN_GRID_STEPS = 8     # >= 4 steps per TensorCore on v7x for DMA/compute overlap


def _pick_layout(n):
    """Choose (lanes, rows, tile_m, grid_m) for N samples."""
    lanes = _LANES_MAX
    if n < _LANES_MAX * _ROW_QUANTUM:
        # Small problem: narrow the lane width so padding waste stays tiny.
        lanes = min(_LANES_MAX, max(128, 128 * pl.cdiv(n, 128 * _ROW_QUANTUM)))
    rows = pl.cdiv(n, lanes)
    if rows <= _ROW_QUANTUM:
        tile_m = rows                      # single row-block (full-dim block is legal)
    else:
        # Big enough per step to amortize the ~0.35us grid-step overhead, but
        # keep the grid at least _MIN_GRID_STEPS long so both v7x TCs stay fed.
        tile_m = _ROW_QUANTUM * pl.cdiv(rows, _ROW_QUANTUM * _MIN_GRID_STEPS)
        tile_m = min(tile_m, _TILE_M_MAX)
    grid_m = pl.cdiv(rows, tile_m)
    return lanes, rows, tile_m, grid_m


def _box_sdf_kernel(pts_ref, center_ref, half_ref, out_ref, *, row_chunk, n_chunks):
    """pts_ref: (3, tile_m, lanes) channel-major points (VMEM, f32 or bf16).
    center_ref / half_ref: (3,) f32 SMEM (box center, side_lengths / 2).
    out_ref: (tile_m, lanes) signed distances."""
    cx, cy, cz = center_ref[0], center_ref[1], center_ref[2]
    hx, hy, hz = half_ref[0], half_ref[1], half_ref[2]

    def chunk(i):
        r0 = i * row_chunk
        if not isinstance(r0, int):
            r0 = pl.multiple_of(r0, row_chunk)
        rows = pl.ds(r0, row_chunk)

        # Channel-by-channel accumulation keeps the live set to a few vregs per
        # chunk, so the whole chain stays in registers (no whole-slab temps
        # round-tripping VMEM).
        dx = jnp.abs(pts_ref[0, rows, :].astype(jnp.float32) - cx) - hx
        ox = jnp.maximum(dx, 0.0)
        sumsq = ox * ox
        dmax = dx

        dy = jnp.abs(pts_ref[1, rows, :].astype(jnp.float32) - cy) - hy
        oy = jnp.maximum(dy, 0.0)
        sumsq = sumsq + oy * oy
        dmax = jnp.maximum(dmax, dy)

        dz = jnp.abs(pts_ref[2, rows, :].astype(jnp.float32) - cz) - hz
        oz = jnp.maximum(dz, 0.0)
        sumsq = sumsq + oz * oz
        dmax = jnp.maximum(dmax, dz)

        sd = jnp.sqrt(sumsq) + jnp.minimum(dmax, 0.0)
        out_ref[rows, :] = sd.astype(out_ref.dtype)

    if n_chunks == 1:
        chunk(0)
    else:
        def body(i, carry):
            chunk(i)
            return carry
        lax.fori_loop(0, n_chunks, body, 0)


def box_sdf_channel_major(pts_cm, center, side_lengths, *, out_dtype=None):
    """Signed distance to an axis-aligned box.

    pts_cm: (3, N) channel-major points. Preferred entry point: no transpose
    pass is needed when the producer emits this layout (and no pad pass when
    N is a multiple of 128). Returns (N, 1) with dtype `out_dtype`
    (default: dtype of pts_cm)."""
    assert pts_cm.ndim == 2 and pts_cm.shape[0] == 3
    n = pts_cm.shape[1]
    io_dtype = pts_cm.dtype
    if out_dtype is None:
        out_dtype = io_dtype

    lanes, rows, tile_m, grid_m = _pick_layout(n)
    n_pad = rows * lanes
    if n_pad != n:
        pts_cm = jnp.pad(pts_cm, ((0, 0), (0, n_pad - n)))
    pts3 = pts_cm.reshape(3, rows, lanes)

    c = jnp.asarray(center, jnp.float32).reshape(3)
    h = jnp.asarray(side_lengths, jnp.float32).reshape(3) * 0.5

    # In-kernel row-chunk size: 8 rows for 32-bit I/O, 16 for packed 16-bit I/O
    # (keeps dynamic slices aligned to the native sublane tiling).
    row_quantum = 8 if jnp.dtype(io_dtype).itemsize >= 4 else 16
    if tile_m % row_quantum == 0:
        row_chunk, n_chunks = row_quantum, tile_m // row_quantum
    else:
        row_chunk, n_chunks = tile_m, 1

    kernel = functools.partial(_box_sdf_kernel, row_chunk=row_chunk, n_chunks=n_chunks)

    out = pl.pallas_call(
        kernel,
        grid=(grid_m,),
        in_specs=[
            pl.BlockSpec((3, tile_m, lanes), lambda i: (0, i, 0)),
            pl.BlockSpec(memory_space=pltpu.MemorySpace.SMEM),
            pl.BlockSpec(memory_space=pltpu.MemorySpace.SMEM),
        ],
        out_specs=pl.BlockSpec((tile_m, lanes), lambda i: (i, 0)),
        out_shape=jax.ShapeDtypeStruct((rows, lanes), out_dtype),
        compiler_params=pltpu.CompilerParams(
            dimension_semantics=("parallel",),
            vmem_limit_bytes=32 * 1024 * 1024,
            # Let XLA fuse the points producer (e.g. the row->channel-major
            # transpose of the generic path) into the kernel's input fetch.
            allow_input_fusion=[True, False, False],
        ),
    )(pts3, c, h)

    out = out.reshape(n_pad)
    if n_pad != n:
        out = out[:n]   # epilogue slice only for ragged N; free when aligned
    return out[:, None]


def box_sdf_forward(sample_points, center, side_lengths, *, out_dtype=None):
    """sample_points: (..., 3), any leading dims. Returns (N, 1).

    This generic path transposes to channel-major (one extra HBM pass); when
    possible produce (3, N) points upstream and call box_sdf_channel_major."""
    pts = sample_points.reshape(-1, 3)
    return box_sdf_channel_major(jnp.transpose(pts, (1, 0)), center, side_lengths,
                                 out_dtype=out_dtype)


def box_sdf_reference(sample_points, center, side_lengths):
    """Pure-JAX mirror of the torch forward."""
    x = sample_points.reshape(-1, 3).astype(jnp.float32)
    diff = jnp.abs(x - jnp.reshape(center, (1, 3))) - jnp.reshape(side_lengths, (1, 3)) / 2.0
    outside = jnp.linalg.norm(jnp.maximum(diff, 0.0), axis=-1)
    inside = jnp.minimum(jnp.max(diff, axis=-1), 0.0)
    return (outside + inside)[:, None]


if __name__ == "__main__":
    key = jax.random.PRNGKey(0)
    k_pts, k_small = jax.random.split(key, 2)

    center = jnp.array([0.1, -0.2, 0.05], jnp.float32)
    side_lengths = jnp.array([1.0, 1.5, 0.75], jnp.float32)

    # Ray-bundle-like input: 128 rays x 1024 samples -> 131072 points (grid of 8).
    n_rays, n_per_ray = 128, 1024
    pts = 2.0 * jax.random.normal(k_pts, (n_rays, n_per_ray, 3), jnp.float32)

    out = jax.block_until_ready(box_sdf_forward(pts, center, side_lengths))
    ref = box_sdf_reference(pts, center, side_lengths)
    assert out.shape == (n_rays * n_per_ray, 1)
    assert jnp.allclose(out, ref, atol=1e-4, rtol=1e-4)

    # Channel-major fast path (no transpose pass in the wrapper).
    pts_cm = jnp.transpose(pts.reshape(-1, 3), (1, 0))
    out_cm = jax.block_until_ready(box_sdf_channel_major(pts_cm, center, side_lengths))
    assert jnp.allclose(out_cm, ref, atol=1e-4, rtol=1e-4)

    # Small / ragged N exercises adaptive lanes + padding path.
    pts_small = 1.5 * jax.random.normal(k_small, (7, 33, 3), jnp.float32)
    out_s = jax.block_until_ready(box_sdf_forward(pts_small, center, side_lengths))
    ref_s = box_sdf_reference(pts_small, center, side_lengths)
    assert out_s.shape == (7 * 33, 1)
    assert jnp.allclose(out_s, ref_s, atol=1e-4, rtol=1e-4)

    # bf16 I/O path (halves HBM traffic); math stays f32 in-kernel.
    pts_bf16 = pts.astype(jnp.bfloat16)
    out_b = jax.block_until_ready(box_sdf_forward(pts_bf16, center, side_lengths))
    ref_b = box_sdf_reference(pts_bf16.astype(jnp.float32), center, side_lengths)
    assert out_b.dtype == jnp.bfloat16
    assert jnp.allclose(out_b.astype(jnp.float32), ref_b, atol=5e-2, rtol=2e-2)

    print("KERNEL_OK")
</pallas_src>

<mosaic_0001>
module attributes {stable_mosaic.version = 11 : i64} {
  func.func @_box_sdf_kernel(%arg0: i32, %arg1: memref<3x16x1024xf32, #tpu.memory_space<vmem>>, %arg2: memref<3xf32, #tpu.memory_space<smem>>, %arg3: memref<3xf32, #tpu.memory_space<smem>>, %arg4: memref<16x1024xf32, #tpu.memory_space<vmem>>) attributes {dimension_semantics = [#tpu.dimension_semantics<parallel>], iteration_bounds = array<i64: 8>, scalar_prefetch = 0 : i64, scratch_operands = 0 : i64, tpu.core_type = #tpu.core_type<tc>, window_params = [{transform_indices = @transform_0, window_bounds = array<i64: 3, 16, 1024>}, {transform_indices = @transform_1, window_bounds = array<i64: 3>}, {transform_indices = @transform_2, window_bounds = array<i64: 3>}, {transform_indices = @transform_3, window_bounds = array<i64: 16, 1024>}]} {
    %c0 = arith.constant 0 : index
    %0 = memref.load %arg2[%c0] : memref<3xf32, #tpu.memory_space<smem>>
    %c1 = arith.constant 1 : index
    %1 = memref.load %arg2[%c1] : memref<3xf32, #tpu.memory_space<smem>>
    %c2 = arith.constant 2 : index
    %2 = memref.load %arg2[%c2] : memref<3xf32, #tpu.memory_space<smem>>
    %c0_0 = arith.constant 0 : index
    %3 = memref.load %arg3[%c0_0] : memref<3xf32, #tpu.memory_space<smem>>
    %c1_1 = arith.constant 1 : index
    %4 = memref.load %arg3[%c1_1] : memref<3xf32, #tpu.memory_space<smem>>
    %c2_2 = arith.constant 2 : index
    %5 = memref.load %arg3[%c2_2] : memref<3xf32, #tpu.memory_space<smem>>
    %c0_i32 = arith.constant 0 : i32
    %c2_i32 = arith.constant 2 : i32
    %6 = arith.addi %c0_i32, %c2_i32 : i32
    %c1_i32 = arith.constant 1 : i32
    scf.for %arg5 = %c0_i32 to %6 step %c1_i32  : i32 {
      %c8_i32 = arith.constant 8 : i32
      %7 = arith.muli %arg5, %c8_i32 : i32
      %8 = tpu.assume_multiple %7, 8 : i32
      %c0_4 = arith.constant 0 : index
      %9 = arith.index_cast %8 : i32 to index
      %c0_5 = arith.constant 0 : index
      %10 = vector.load %arg1[%c0_4, %9, %c0_5] : memref<3x16x1024xf32, #tpu.memory_space<vmem>>, vector<1x8x1024xf32>
      %11 = vector.shape_cast %10 : vector<1x8x1024xf32> to vector<8x1024xf32>
      %12 = vector.broadcast %0 : f32 to vector<8x1024xf32>
      %13 = arith.subf %11, %12 : vector<8x1024xf32>
      %14 = math.absf %13 : vector<8x1024xf32>
      %15 = vector.broadcast %3 : f32 to vector<8x1024xf32>
      %16 = arith.subf %14, %15 : vector<8x1024xf32>
      %cst = arith.constant 0.000000e+00 : f32
      %17 = vector.broadcast %cst : f32 to vector<8x1024xf32>
      %18 = arith.maximumf %16, %17 : vector<8x1024xf32>
      %19 = arith.mulf %18, %18 : vector<8x1024xf32>
      %c1_6 = arith.constant 1 : index
      %20 = arith.index_cast %8 : i32 to index
      %c0_7 = arith.constant 0 : index
      %21 = vector.load %arg1[%c1_6, %20, %c0_7] : memref<3x16x1024xf32, #tpu.memory_space<vmem>>, vector<1x8x1024xf32>
      %22 = vector.shape_cast %21 : vector<1x8x1024xf32> to vector<8x1024xf32>
      %23 = vector.broadcast %1 : f32 to vector<8x1024xf32>
      %24 = arith.subf %22, %23 : vector<8x1024xf32>
      %25 = math.absf %24 : vector<8x1024xf32>
      %26 = vector.broadcast %4 : f32 to vector<8x1024xf32>
      %27 = arith.subf %25, %26 : vector<8x1024xf32>
      %cst_8 = arith.constant 0.000000e+00 : f32
      %28 = vector.broadcast %cst_8 : f32 to vector<8x1024xf32>
      %29 = arith.maximumf %27, %28 : vector<8x1024xf32>
      %30 = arith.mulf %29, %29 : vector<8x1024xf32>
      %31 = arith.addf %19, %30 : vector<8x1024xf32>
      %32 = arith.maximumf %16, %27 : vector<8x1024xf32>
      %c2_9 = arith.constant 2 : index
      %33 = arith.index_cast %8 : i32 to index
      %c0_10 = arith.constant 0 : index
      %34 = vector.load %arg1[%c2_9, %33, %c0_10] : memref<3x16x1024xf32, #tpu.memory_space<vmem>>, vector<1x8x1024xf32>
      %35 = vector.shape_cast %34 : vector<1x8x1024xf32> to vector<8x1024xf32>
      %36 = vector.broadcast %2 : f32 to vector<8x1024xf32>
      %37 = arith.subf %35, %36 : vector<8x1024xf32>
      %38 = math.absf %37 : vector<8x1024xf32>
      %39 = vector.broadcast %5 : f32 to vector<8x1024xf32>
      %40 = arith.subf %38, %39 : vector<8x1024xf32>
      %cst_11 = arith.constant 0.000000e+00 : f32
      %41 = vector.broadcast %cst_11 : f32 to vector<8x1024xf32>
      %42 = arith.maximumf %40, %41 : vector<8x1024xf32>
      %43 = arith.mulf %42, %42 : vector<8x1024xf32>
      %44 = arith.addf %31, %43 : vector<8x1024xf32>
      %45 = arith.maximumf %32, %40 : vector<8x1024xf32>
      %46 = math.sqrt %44 : vector<8x1024xf32>
      %cst_12 = arith.constant 0.000000e+00 : f32
      %47 = vector.broadcast %cst_12 : f32 to vector<8x1024xf32>
      %48 = arith.minimumf %45, %47 : vector<8x1024xf32>
      %49 = arith.addf %46, %48 : vector<8x1024xf32>
      %50 = arith.index_cast %8 : i32 to index
      %c0_13 = arith.constant 0 : index
      %51 = vector.load %arg4[%50, %c0_13] : memref<16x1024xf32, #tpu.memory_space<vmem>>, vector<8x1024xf32>
      tpu.vector_store %arg4[%50, %c0_13], %49 {strides = array<i32>} : memref<16x1024xf32, #tpu.memory_space<vmem>>, vector<8x1024xf32>,
    }
    %c2_i32_3 = arith.constant 2 : i32
    return
  }
  func.func @transform_0(%arg0: i32) -> (i32, i32, i32) {
    %c0_i32 = arith.constant 0 : i32
    %c0_i32_0 = arith.constant 0 : i32
    %c0_i32_1 = arith.constant 0 : i32
    return %c0_i32, %arg0, %c0_i32_0 : i32, i32, i32
  }
  func.func @transform_1(%arg0: i32) -> i32 {
    %c0_i32 = arith.constant 0 : i32
    %c0_i32_0 = arith.constant 0 : i32
    return %c0_i32 : i32
  }
  func.func @transform_2(%arg0: i32) -> i32 {
    %c0_i32 = arith.constant 0 : i32
    %c0_i32_0 = arith.constant 0 : i32
    return %c0_i32 : i32
  }
  func.func @transform_3(%arg0: i32) -> (i32, i32) {
    %c0_i32 = arith.constant 0 : i32
    %c0_i32_0 = arith.constant 0 : i32
    return %arg0, %c0_i32 : i32, i32
  }
}

</mosaic_0001>

<bundles_post_ra>
// kernel: tpu_custom_call.1
= control target key start
LH: loop header
LB: loop body
LE: loop exit
PB: predicated region body
PF: predicated region fallthrough
CT: control target
= control target key end

     0   :  { %8 = vsyncpa [#allocation3], 0  ;;  %s1346_s0 = inlined_call_operand.hbm [shape: f32[3,128,1024], index: 0, kind: input, shape index: {}]   ;;  %s1347_s1 = inlined_call_operand.hbm [shape: f32[3], index: 1, kind: input, shape index: {}]   ;;  %s1348_s2 = inlined_call_operand.hbm [shape: f32[3], index: 2, kind: input, shape index: {}]   ;;  %s1349_s3 = inlined_call_operand.hbm [shape: f32[128,1024], index: 3, kind: output, shape index: {}]  }
   0x1   :  { %10 = vsyncpa [#allocation3 + $0x1], 0 }
   0x2   :  { %11 = vsyncpa [#allocation5], 0 }
   0x3   :  { %12 = vsyncpa [#allocation8], 0 }
   0x4   :  { %13 = vsyncpa [#allocation4], 0 }
   0x5   :  { %15 = vsyncpa [#allocation4 + $0x1], 0  ;;  %s949_s12 = smov 0   ;;  %s951_s13 = smov 0  }
   0x6   :  { %s953_s14 = smov 0   ;;  %s955_s15 = smov 0  }
   0x7 LB: > { %s970_s16 = sadd.s32 4294967295, %s912_s15   ;;  %s655_s17 = sadd.s32 4294967294, %s912_s15   ;;  %s912_s15 = sphi %s955_s15, %s1358_s15   ;;  %s908_s14 = sphi %s953_s14, %s1357_s14   ;;  %s904_s13 = sphi %s951_s13, %s1356_s13   ;;  %s900_s12 = sphi %s949_s12, %s1355_s12  }
   0x8   : > { %s974_s18 = sadd.s32 1, %s912_s15   ;;  %s28_s19 = sadd.s32 1, %s908_s14 }
   0x9   : > { %s25_s20 = ssub.s32 %s912_s15, %s974_s18  ;;  %p35_p0 = scmp.ne.s32.totalorder %s908_s14, %s904_s13 }
   0xa   : > { %p26_p1 = scmp.eq.s32.totalorder %s25_s20, 0  ;;  %p36_p2 = scmp.eq.s32.totalorder %s912_s15, 0 }
   0xb   : > { %p41_p3 = scmp.ne.s32.totalorder %s904_s13, %s900_s12  ;;  %p42_p4 = scmp.eq.s32.totalorder %s970_s16, 0 }
   0xc   : > { %s986_s21 = scalar_select %p26_p1, %s908_s14, %s28_s19  }
   0xd   : > { %p988_p5 = por %p36_p2, %p35_p0  ;;  %p994_p6 = por %p42_p4, %p41_p3 }
   0xe   : > { %p107_p7 = scmp.eq.s32.totalorder %s970_s16, 7  ;;  %p113_p8 = scmp.eq.s32.totalorder %s655_s17, 7 }
   0xf   : > { %p656_p9 = scmp.ge.s32.totalorder %s912_s15, 1  ;;  %p120_p10 = scmp.lt.s32.totalorder %s912_s15, 9 }
  0x10   : > { %p1001_p11 = por %p107_p7, %p35_p0  ;;  %p1005_p12 = por %p113_p8, %p41_p3 }
  0x11   : > { %p1009_p13 = pnand %p656_p9, %p120_p10  ;;  %s918_s27 = smov [#allocation6]  }
  0x12   : > { %s919_s30 = smov [#allocation7]   ;;  %p659_p0 = scmp.ge.s32.totalorder %s912_s15, 8 }
  0x13   : > { %p732_p1 = pneg %p1009_p13 }
  0x14   : > { %147 = sbr.rel (%p659_p0) target bundleno = 39 (0x27), region = 24 }
  0x15   : > { %p733_p2 = pnand %p732_p1, %p42_p4 }
  0x17   : > { %735 = dma.hbm_to_smem (!%p733_p2), %s1347_s1, 16, %s918_s27, [#allocation5]  }
  0x18   : > { %738 = dma.hbm_to_smem (!%p733_p2), %s1348_s2, 16, %s919_s30, [#allocation8]  }
  0x19   : > { %s151_s6 = sand.u32 1, %s908_s14   ;;  %s704_s8 = sshll.u32 %s912_s15, 11 }
  0x1a   : > { %s711_s7 = smul.u32 384, %s151_s6  ;;  %s920_s9 = smov 16384  }
  0x1b   : > { %718 = sst [smem:[#allocation11]] (%p988_p5), %s920_s9  ;;  %s162_s19 = scalar_lea.hbm %s1346_s0, %s704_s8 }
  0x1c   : > { %s717_s10 = scalar_select %p988_p5, [#allocation0], [#allocation12] }
  0x1d   : > { %s155_s27 = scalar_lea.vmem [#allocation2], %s711_s7  ;;  %s921_s29 = smov 2048  }
  0x1e   : > { %s167_s20 = sld [smem:[%s717_s10]]   ;;  %s175_s28 = sshll.u32 %s155_s27, 4  ;;  %s176_s28 = int_to_ptr.vmem [resolvable:$true] %s175_s28 }
  0x1f   : > { %719 = sst [smem:[#allocation11 + $0x1]] (%p988_p5), %s921_s29  ;;  %s922_s30 = smov 2  }
  0x20   : > { %720 = sst [smem:[#allocation11 + $0x2]] (%p988_p5), %s922_s30  ;;  %s923_s4 = smov 1024  }
  0x21   : > { %721 = sst [smem:[#allocation11 + $0x3]] (%p988_p5), %s923_s4  ;;  %s924_s5 = smov 64  }
  0x22   : > { %722 = sst [smem:[#allocation11 + $0x4]] (%p988_p5), %s923_s4  ;;  %s152_s7 = scalar_lea.sflag [#allocation3], %s151_s6 }
  0x23   : > { %723 = sst [smem:[#allocation11 + $0x5]] (%p988_p5), %s924_s5  ;;  %s925_s10 = smov 131072  }
  0x24   : > { %s663_s8 = sshll.u32 %s167_s20, 26 }
  0x25   : > { %s664_s9 = sadd.s32 134217728, %s663_s8 }
  0x26   : > { %724 = dma.general (%p988_p5), %s162_s19, 6144, %s176_s28, %s152_s7, %s925_s10, [#allocation11], %s664_s9, 0  }
  0x27 PF: > { %200 = sbr.rel (%p1009_p13) target bundleno = 151 (0x97), region = 32  ;;  %s1048_s11 = sand.u32 (!%p1009_p13), 1, %s904_s13  }
  0x28   : > { %s712_s17 = smul.u32 (!%p1009_p13), 384, %s1048_s11  ;;  %s203_s27 = scalar_lea.sflag (!%p1009_p13), [#allocation3], %s1048_s11 }
  0x2a   : > { %s1052_s29 = scalar_lea.vmem (!%p1009_p13), [#allocation2], %s712_s17 }
  0x2c   : > { %883 = dma.done.wait (%p994_p6), %s203_s27, 6144  }
  0x2d   : > { %885 = vsyncadd (%p994_p6), %s203_s27, 4294961152 }
  0x2e   : > { %887 = dma.done.wait (%p42_p4), [#allocation5], 16  }
  0x2f   : > { %889 = vsyncadd (%p42_p4), [#allocation5], 4294967280 }
  0x30   : > { %891 = dma.done.wait (%p42_p4), [#allocation8], 16  }
  0x31   : > { %893 = vsyncadd (%p42_p4), [#allocation8], 4294967280 }
  0x32   : > { %219 = sfence }
  0x33   : > { %s668_s22 = sshll.u32 %s1048_s11, 7  ;;  %s1067_s26 = sld [smem:[#allocation6]] }
  0x34   : > { %s1069_s6 = sld [smem:[#allocation6 + $0x1]]  ;;  %s1079_s30 = scalar_lea.vmem [#allocation9], %s668_s22 }
  0x35   : > { %s1071_s23 = sld [smem:[#allocation6 + $0x2]]  ;;  %s1081_s4 = smov 0  }
  0x36   : > { %s1073_s19 = sld [smem:[#allocation7]] }
  0x37   : > { %s1075_s20 = sld [smem:[#allocation7 + $0x1]] }
  0x38   : > { %s1077_s28 = sld [smem:[#allocation7 + $0x2]] }
  0x39 LB: >> { %s673_s5 = sshll.u32 %s916_s4, 3  ;;  %v1091_v0 = vstv %s1067_s26  ;;  %s251_s4 = sadd.s32 1, %s916_s4   ;;  %s916_s4 = sphi %s1081_s4, %s251_s4  }
  0x3a   : >> { %s1087_s8 = sshra.s32 %s673_s5, 3  ;;  %v1094_v1 = vstv %s1069_s6  ;;  %p248_p3 = scmp.ge.s32.totalorder %s251_s4, 2  }
  0x3b   : >> { %s705_s9 = sshll.u32 %s1087_s8, 6  ;;  %v1097_v2 = vstv %s1071_s23  ;;  %s710_s17 = sshll.u32 (%p248_p3), %s970_s16, 11 }
  0x3c   : >> { %s1102_s7 = scalar_lea.vmem %s1052_s29, %s705_s9 [#allocation2]  ;;  %v1106_v4 = vstv %s1073_s19  ;;  %s1211_s10 = scalar_lea.vmem %s1079_s30, %s705_s9 [#allocation9] }
  0x3d   : >> { %v258_v3 = vld [vmem:[%s1102_s7] sm:$0xff]  ;;  %v1113_v9 = vstv %s1075_s20  ;;  %v259_v11 = vld [vmem:[%s1102_s7 + $0x8] sm:$0xff]  ;;  %v260_v18 = vld [vmem:[%s1102_s7 + $0x10] sm:$0xff]  ;;  %s1301_s5 = scalar_lea.hbm (%p248_p3), %s1349_s3, %s710_s17  ;;  %s543_s8 = sshll.u32 (%p248_p3), %s1079_s30, 4  ;;  %s1304_s8 = int_to_ptr.vmem [resolvable:$true] %s543_s8 }
  0x3e   : >> { %v678_v5 = vld [vmem:[%s1102_s7 + $0x80] sm:$0xff]  ;;  %v267_v7 = vsub.f32 %v258_v3, %v1091_v0  ;;  %v679_v12 = vld [vmem:[%s1102_s7 + $0x88] sm:$0xff]  ;;  %v1120_v14 = vstv %s1077_s28  ;;  %v268_v15 = vsub.f32 %v259_v11, %v1091_v0  ;;  %v680_v19 = vld [vmem:[%s1102_s7 + $0x90] sm:$0xff]  ;;  %v269_v23 = vsub.f32 %v260_v18, %v1091_v0  ;;  %s529_s9 = scalar_lea.sflag (%p248_p3), [#allocation4], %s1048_s11  ;;  %s926_s29 = smov (%p248_p3), [#allocation9]  }
  0x3f   : >> { %v688_v6 = vld [vmem:[%s1102_s7 + $0x100] sm:$0xff]  ;;  %v320_v8 = vsub.f32 %v678_v5, %v1094_v1  ;;  %v689_v13 = vld [vmem:[%s1102_s7 + $0x108] sm:$0xff]  ;;  %v321_v16 = vsub.f32 %v679_v12, %v1094_v1  ;;  %v322_v27 = vsub.f32 %v680_v19, %v1094_v1  ;;  %v690_v45 = vld [vmem:[%s1102_s7 + $0x110] sm:$0xff]  ;;  %s840_s26 = sshll.u32 (%p248_p3), %s926_s29, 4  ;;  %s841_s26 = int_to_ptr.vmem [resolvable:$false] %s840_s26 }
  0x40   : >> { %v389_v10 = vsub.f32 %v688_v6, %v1097_v2  ;;  %v390_v17 = vsub.f32 %v689_v13, %v1097_v2  ;;  %v275_v20 = vand.u32 2147483647, %v267_v7  ;;  %v276_v24 = vand.u32 2147483647, %v268_v15  ;;  %v261_v46 = vld [vmem:[%s1102_s7 + $0x18] sm:$0xff]  ;;  %v262_v7 = vld [vmem:[%s1102_s7 + $0x20] sm:$0xff]  ;;  %p843_p7 = scmp.lt.s32.totalorder (%p248_p3), %s1304_s8, %s841_s26 }
  0x41   : >> { %v328_v21 = vand.u32 2147483647, %v320_v8  ;;  %v329_v25 = vand.u32 2147483647, %v321_v16  ;;  %v277_v34 = vand.u32 2147483647, %v269_v23  ;;  %v391_v57 = vsub.f32 %v690_v45, %v1097_v2 }
  0x42   : >> { %v397_v22 = vand.u32 2147483647, %v389_v10  ;;  %v398_v26 = vand.u32 2147483647, %v390_v17  ;;  %v284_v28 = vsub.f32 %v275_v20, %v1106_v4  ;;  %v285_v31 = vsub.f32 %v276_v24, %v1106_v4  ;;  %v681_v54 = vld [vmem:[%s1102_s7 + $0x98] sm:$0xff]  ;;  %v682_v8 = vld [vmem:[%s1102_s7 + $0xa0] sm:$0xff] }
  0x43   : >> { %v337_v29 = vsub.f32 %v328_v21, %v1113_v9  ;;  %v338_v32 = vsub.f32 %v329_v25, %v1113_v9  ;;  %v330_v38 = vand.u32 2147483647, %v322_v27  ;;  %v286_v52 = vsub.f32 %v277_v34, %v1106_v4  ;;  %v691_v6 = vld [vmem:[%s1102_s7 + $0x118] sm:$0xff]  ;;  %v692_v21 = vld [vmem:[%s1102_s7 + $0x120] sm:$0xff]  ;;  %v263_v34 = vld [vmem:[%s1102_s7 + $0x28] sm:$0xff]  ;;  %s842_s16 = scalar_lea.vmem (%p248_p3), %s841_s26, 4096 }
  0x44   : >> { %v406_v30 = vsub.f32 %v397_v22, %v1120_v14  ;;  %v407_v33 = vsub.f32 %v398_v26, %v1120_v14  ;;  %v292_v35 = vmax.f32 %v284_v28, 0.0  ;;  %v293_v39 = vmax.f32 %v285_v31, 0.0 }
  0x45   : >> { %v345_v36 = vmax.f32 %v337_v29, 0.0  ;;  %v346_v40 = vmax.f32 %v338_v32, 0.0  ;;  %v369_v51 = vmax.f32 %v284_v28, %v337_v29  ;;  %v339_v53 = vsub.f32 %v330_v38, %v1113_v9 }
  0x46   : >> { %v414_v37 = vmax.f32 %v406_v30, 0.0  ;;  %v415_v41 = vmax.f32 %v407_v33, 0.0  ;;  %v300_v42 = vmul.f32 %v292_v35, %v292_v35  ;;  %v301_v47 = vmul.f32 %v293_v39, %v293_v39 }
  0x47   : >> { %v353_v43 = vmul.f32 %v345_v36, %v345_v36  ;;  %v354_v48 = vmul.f32 %v346_v40, %v346_v40  ;;  %v370_v56 = vmax.f32 %v285_v31, %v338_v32  ;;  %v270_v58 = vsub.f32 %v261_v46, %v1091_v0 }
  0x48   : >> { %v422_v44 = vmul.f32 %v414_v37, %v414_v37  ;;  %v423_v49 = vmul.f32 %v415_v41, %v415_v41  ;;  %v294_v60 = vmax.f32 %v286_v52, 0.0  ;;  %v347_v61 = vmax.f32 %v339_v53, 0.0 }
  0x49   : >> { %v361_v50 = vadd.f32 %v353_v43, %v300_v42  ;;  %v362_v55 = vadd.f32 %v354_v48, %v301_v47  ;;  %v399_v63 = vand.u32 2147483647, %v391_v57  ;;  %v278_v3 = vand.u32 2147483647, %v270_v58 }
  0x4a   : >> { %v323_v5 = vsub.f32 %v681_v54, %v1094_v1  ;;  %v1151_v10 = vmax.f32 %v369_v51, %v406_v30  ;;  %v1153_v11 = vmax.f32 %v370_v56, %v407_v33  ;;  %v302_v12 = vmul.f32 %v294_v60, %v294_v60  ;;  %v264_v56 = vld [vmem:[%s1102_s7 + $0x30] sm:$0xff] }
  0x4b   : >> { %v1142_v59 = vadd.f32 %v422_v44, %v361_v50  ;;  %v1144_v62 = vadd.f32 %v423_v49, %v362_v55  ;;  %v355_v13 = vmul.f32 %v347_v61, %v347_v61  ;;  %v408_v15 = vsub.f32 %v399_v63, %v1120_v14  ;;  %v683_v50 = vld [vmem:[%s1102_s7 + $0xa8] sm:$0xff] }
  0x4c   : >> { %v287_v16 = vsub.f32 %v278_v3, %v1106_v4  ;;  %v331_v17 = vand.u32 2147483647, %v323_v5  ;;  %v392_v18 = vsub.f32 %v691_v6, %v1097_v2  ;;  %v271_v19 = vsub.f32 %v262_v7, %v1091_v0  ;;  %v693_v55 = vld [vmem:[%s1102_s7 + $0x128] sm:$0xff] }
  0x4d   : >> { %798 = vrsqrt.f32 %v1142_v59  ;;  %v324_v20 = vsub.f32 %v682_v8, %v1094_v1  ;;  %v363_v22 = vadd.f32 %v355_v13, %v302_v12  ;;  %v371_v23 = vmax.f32 %v286_v52, %v339_v53 }
  0x4e   : >> { %800 = vrsqrt.f32 %v1144_v62  ;;  %v416_v24 = vmax.f32 %v408_v15, 0.0  ;;  %v295_v25 = vmax.f32 %v287_v16, 0.0  ;;  %v340_v26 = vsub.f32 %v331_v17, %v1113_v9 }
  0x4f   : >> { %v400_v27 = vand.u32 2147483647, %v392_v18  ;;  %v279_v28 = vand.u32 2147483647, %v271_v19  ;;  %v332_v29 = vand.u32 2147483647, %v324_v20  ;;  %v393_v33 = vsub.f32 %v692_v21, %v1097_v2 }
  0x50   : >> { %v502_v30 = vmin.f32 %v1151_v10, 0.0  ;;  %v503_v31 = vmin.f32 %v1153_v11, 0.0  ;;  %v424_v32 = vmul.f32 %v416_v24, %v416_v24  ;;  %v303_v35 = vmul.f32 %v295_v25, %v295_v25  ;;  %v684_v24 = vld [vmem:[%s1102_s7 + $0xb0] sm:$0xff] }
  0x51   : >> { %v348_v36 = vmax.f32 %v340_v26, 0.0  ;;  %v409_v37 = vsub.f32 %v400_v27, %v1120_v14  ;;  %v1169_v38 = vsub.f32 %v279_v28, %v1106_v4  ;;  %v1173_v40 = vmax.f32 %v371_v23, %v408_v15  ;;  %v694_v25 = vld [vmem:[%s1102_s7 + $0x130] sm:$0xff] }
  0x52   : >> { %v1171_v39 = vadd.f32 %v424_v32, %v363_v22  ;;  %v1176_v41 = vsub.f32 %v332_v29, %v1113_v9  ;;  %v401_v42 = vand.u32 2147483647, %v393_v33  ;;  %v272_v46 = vsub.f32 %v263_v34, %v1091_v0  ;;  %v265_v32 = vld [vmem:[%s1102_s7 + $0x38] sm:$0xff] }
  0x53   : >> { %v356_v43 = vmul.f32 %v348_v36, %v348_v36  ;;  %v417_v44 = vmax.f32 %v409_v37, 0.0  ;;  %v296_v45 = vmax.f32 %v1169_v38, 0.0  ;;  %vm448_vm0 = vcmp.eq.f32.partialorder %v1142_v59, inf  ;;  %v685_v33 = vld [vmem:[%s1102_s7 + $0xb8] sm:$0xff] }
  0x54   : >> { %vm450_vm1 = vcmp.eq.f32.partialorder %v1142_v59, 0.0  ;;  %v451_v47 = vand.u32 2147483648, %v1142_v59  ;;  %802 = vrsqrt.f32 %v1171_v39  ;;  %vm455_vm2 = vcmp.eq.f32.partialorder %v1144_v62, inf }
  0x55   : >> { %vm457_vm3 = vcmp.eq.f32.partialorder %v1144_v62, 0.0  ;;  %v364_v48 = vadd.f32 %v356_v43, %v303_v35  ;;  %v425_v49 = vmul.f32 %v417_v44, %v417_v44  ;;  %v372_v51 = vmax.f32 %v287_v16, %v340_v26 }
  0x56   : >> { %v304_v52 = vmul.f32 %v296_v45, %v296_v45  ;;  %v349_v53 = vmax.f32 %v1176_v41, 0.0  ;;  %v410_v54 = vsub.f32 %v401_v42, %v1120_v14  ;;  %v458_v58 = vand.u32 2147483648, %v1144_v62 }
  0x57   : >> { %v504_v60 = vmin.f32 %v1173_v40, 0.0  ;;  %v1193_v61 = vadd.f32 %v425_v49, %v364_v48  ;;  %v280_v63 = vand.u32 2147483647, %v272_v46  ;;  %v325_v8 = vsub.f32 %v683_v50, %v1094_v1 }
  0x58   : >> { %v357_v6 = vmul.f32 %v349_v53, %v349_v53  ;;  %v418_v7 = vmax.f32 %v410_v54, 0.0  ;;  %v394_v11 = vsub.f32 %v693_v55, %v1097_v2  ;;  %v273_v12 = vsub.f32 %v264_v56, %v1091_v0 }
  0x59   : >> { %804 = vrsqrt.f32 %v1193_v61  ;;  %v1204_v15 = vmax.f32 %v372_v51, %v409_v37  ;;  %vm462_vm4 = vcmp.eq.f32.partialorder %v1171_v39, inf  ;;  %v1218_v20 = vsub.f32 %v280_v63, %v1106_v4 }
  0x5a   : >> { %v799_v57 = vpop.eup %798  ;;  %v365_v16 = vadd.f32 %v357_v6, %v304_v52  ;;  %v426_v17 = vmul.f32 %v418_v7, %v418_v7  ;;  %v333_v23 = vand.u32 2147483647, %v325_v8  ;;  %v402_v28 = vand.u32 2147483647, %v394_v11 }
  0x5b   : >> { %v801_v3 = vpop.eup %800  ;;  %v447_v5 = vmul.f32 %v799_v57, %v1142_v59  ;;  %v297_v27 = vmax.f32 %v1218_v20, 0.0  ;;  %v281_v29 = vand.u32 2147483647, %v273_v12  ;;  %vm464_vm5 = vcmp.eq.f32.partialorder %v1171_v39, 0.0 }
  0x5c   : >> { %v454_v10 = vmul.f32 %v801_v3, %v1144_v62  ;;  %v1222_v22 = vadd.f32 %v426_v17, %v365_v16  ;;  %v373_v34 = vmax.f32 %v1169_v38, %v1176_v41  ;;  %v1241_v35 = vsub.f32 %v402_v28, %v1120_v14 }
  0x5d   : >> { %v449_v13 = vsel %vm448_vm0, %v1142_v59, %v447_v5  ;;  %v1244_v36 = vsub.f32 %v281_v29, %v1106_v4  ;;  %v305_v37 = vmul.f32 %v297_v27, %v297_v27  ;;  %v326_v42 = vsub.f32 %v684_v24, %v1094_v1  ;;  %v695_v5 = vld [vmem:[%s1102_s7 + $0x138] sm:$0xff]  ;;  %s836_s7 = scalar_lea.vmem (%p248_p3), %s1304_s8, 2048 }
  0x5e   : >> { %v452_v18 = vsel %vm450_vm1, %v451_v47, %v449_v13  ;;  %v456_v19 = vsel %vm455_vm2, %v1144_v62, %v454_v10  ;;  %v505_v62 = vmin.f32 %v1204_v15, 0.0  ;;  %806 = vrsqrt.f32 %v1222_v22  ;;  %p837_p4 = scmp.ne.s32.totalorder (%p248_p3), %s1304_s8, %s836_s7  ;;  %p844_p8 = scmp.lt.s32.totalorder (%p248_p3), %s842_s16, %s836_s7 }
  0x5f   : >> { %v510_v21 = vadd.f32 %v502_v30, %v452_v18  ;;  %v459_v59 = vsel %vm457_vm3, %v458_v58, %v456_v19  ;;  %v465_v30 = vand.u32 2147483648, %v1171_v39  ;;  %v395_v43 = vsub.f32 %v694_v25, %v1097_v2 }
  0x60   : >> { %v511_v26 = vadd.f32 %v503_v31, %v459_v59  ;;  %v1238_v31 = vsub.f32 %v333_v23, %v1113_v9  ;;  %v274_v44 = vsub.f32 %v265_v32, %v1091_v0  ;;  %v419_v38 = vmax.f32 %v1241_v35, 0.0  ;;  %p838_p5 = pnand (%p248_p3), %p837_p4, %p1001_p11  ;;  %p845_p9 = por (%p248_p3), %p844_p8, %p843_p7 }
  0x61   : >> { %520 = vst [vmem:[%s1211_s10] sm:$0xff] %v510_v21  ;;  %v803_v45 = vpop.eup %802  ;;  %v298_v41 = vmax.f32 %v1244_v36, 0.0  ;;  %v327_v47 = vsub.f32 %v685_v33, %v1094_v1  ;;  %v334_v49 = vand.u32 2147483647, %v326_v42  ;;  %v403_v50 = vand.u32 2147483647, %v395_v43 }
  0x62   : >> { %521 = vst [vmem:[%s1211_s10 + $0x8] sm:$0xff] %v511_v26  ;;  %v350_v46 = vmax.f32 %v1238_v31, 0.0  ;;  %v461_v48 = vmul.f32 %v803_v45, %v1171_v39  ;;  %v282_v51 = vand.u32 2147483647, %v274_v44  ;;  %vm469_vm6 = vcmp.eq.f32.partialorder %v1193_v61, inf  ;;  %p839_p6 = pneg (%p248_p3), %p838_p5 }
  0x63   : >> { %v442_v52 = vmax.f32 %v373_v34, %v410_v54  ;;  %v427_v0 = vmul.f32 %v419_v38, %v419_v38  ;;  %v472_v56 = vand.u32 2147483648, %v1193_v61  ;;  %v343_v57 = vsub.f32 %v334_v49, %v1113_v9 }
  0x64   : >> { %v358_v53 = vmul.f32 %v350_v46, %v350_v46  ;;  %v463_v55 = vsel %vm462_vm4, %v1171_v39, %v461_v48  ;;  %v412_v1 = vsub.f32 %v403_v50, %v1120_v14  ;;  %v1264_v3 = vsub.f32 %v282_v51, %v1106_v4  ;;  %p846_p10 = pnand (%p248_p3), %p845_p9, %p839_p6 }
  0x65   : >> { %v466_v58 = vsel %vm464_vm5, %v465_v30, %v463_v55  ;;  %v335_v54 = vand.u32 2147483647, %v327_v47  ;;  %v306_v8 = vmul.f32 %v298_v41, %v298_v41  ;;  %v351_v10 = vmax.f32 %v343_v57, 0.0 }
  0x66   : >> { %v366_v63 = vadd.f32 %v358_v53, %v305_v37  ;;  %v805_v6 = vpop.eup %804  ;;  %v512_v7 = vadd.f32 %v504_v60, %v466_v58  ;;  %v420_v11 = vmax.f32 %v412_v1, 0.0  ;;  %vm471_vm7 = vcmp.eq.f32.partialorder %v1193_v61, 0.0 }
  0x67   : >> { %v468_v12 = vmul.f32 %v805_v6, %v1193_v61  ;;  %v344_v39 = vsub.f32 %v335_v54, %v1113_v9  ;;  %v359_v15 = vmul.f32 %v351_v10, %v351_v10  ;;  %v396_v16 = vsub.f32 %v695_v5, %v1097_v2 }
  0x68   : >> { %v435_v13 = vadd.f32 %v427_v0, %v366_v63  ;;  %522 = vst [vmem:[%s1211_s10 + $0x10] sm:$0xff] %v512_v7  ;;  %v428_v4 = vmul.f32 %v420_v11, %v420_v11  ;;  %v299_v60 = vmax.f32 %v1264_v3, 0.0  ;;  %v506_v18 = vmin.f32 %v442_v52, 0.0 }
  0x69   : >> { %v470_v40 = vsel %vm469_vm6, %v1193_v61, %v468_v12  ;;  %v367_v19 = vadd.f32 %v359_v15, %v306_v8  ;;  %vm476_vm8 = vcmp.eq.f32.partialorder %v1222_v22, inf  ;;  %v479_v9 = vand.u32 2147483648, %v1222_v22 }
  0x6a   : >> { %808 = vrsqrt.f32 %v435_v13  ;;  %v473_v17 = vsel %vm471_vm7, %v472_v56, %v470_v40  ;;  %v352_v23 = vmax.f32 %v344_v39, 0.0  ;;  %vm478_vm9 = vcmp.eq.f32.partialorder %v1222_v22, 0.0 }
  0x6b   : >> { %v807_v21 = vpop.eup %806  ;;  %v513_v59 = vadd.f32 %v505_v62, %v473_v17  ;;  %v436_v24 = vadd.f32 %v428_v4, %v367_v19  ;;  %v404_v61 = vand.u32 2147483647, %v396_v16  ;;  %v307_v25 = vmul.f32 %v299_v60, %v299_v60 }
  0x6c   : >> { %v475_v2 = vmul.f32 %v807_v21, %v1222_v22  ;;  %v360_v26 = vmul.f32 %v352_v23, %v352_v23  ;;  %v374_v29 = vmax.f32 %v1218_v20, %v1238_v31  ;;  %v375_v42 = vmax.f32 %v1244_v36, %v343_v57 }
  0x6d   : >> { %523 = vst [vmem:[%s1211_s10 + $0x18] sm:$0xff] %v513_v59  ;;  %810 = vrsqrt.f32 %v436_v24  ;;  %v413_v32 = vsub.f32 %v404_v61, %v1120_v14  ;;  %vm483_vm10 = vcmp.eq.f32.partialorder %v435_v13, inf  ;;  %vm485_vm11 = vcmp.eq.f32.partialorder %v435_v13, 0.0 }
  0x6e   : >> { %v477_v27 = vsel %vm476_vm8, %v1222_v22, %v475_v2  ;;  %v368_v62 = vadd.f32 %v360_v26, %v307_v25  ;;  %v443_v34 = vmax.f32 %v374_v29, %v1241_v35  ;;  %v486_v22 = vand.u32 2147483648, %v435_v13 }
  0x6f   : >> { %v480_v28 = vsel %vm478_vm9, %v479_v9, %v477_v27  ;;  %v421_v33 = vmax.f32 %v413_v32, 0.0  ;;  %v444_v20 = vmax.f32 %v375_v42, %v412_v1  ;;  %vm490_vm12 = vcmp.eq.f32.partialorder %v436_v24, inf }
  0x70   : >> { %v514_v30 = vadd.f32 %v506_v18, %v480_v28  ;;  %v507_v46 = vmin.f32 %v443_v34, 0.0  ;;  %v493_v35 = vand.u32 2147483648, %v436_v24  ;;  %vm492_vm13 = vcmp.eq.f32.partialorder %v436_v24, 0.0 }
  0x71   : >> { %v429_v37 = vmul.f32 %v421_v33, %v421_v33  ;;  %v508_v36 = vmin.f32 %v444_v20, 0.0  ;;  %v376_v48 = vmax.f32 %v1264_v3, %v344_v39 }
  0x72   : >> { %524 = vst [vmem:[%s1211_s10 + $0x20] sm:$0xff] %v514_v30 }
  0x73   : >> { %v437_v43 = vadd.f32 %v429_v37, %v368_v62  ;;  %v445_v52 = vmax.f32 %v376_v48, %v413_v32 }
  0x75   : >> { %812 = vrsqrt.f32 %v437_v43  ;;  %vm497_vm14 = vcmp.eq.f32.partialorder %v437_v43, inf  ;;  %v500_v0 = vand.u32 2147483648, %v437_v43  ;;  %vm499_vm15 = vcmp.eq.f32.partialorder %v437_v43, 0.0 }
  0x76   : >> { %v509_v56 = vmin.f32 %v445_v52, 0.0 }
  0x77   : >> { %v809_v44 = vpop.eup %808 }
  0x78   : >> { %v482_v45 = vmul.f32 %v809_v44, %v435_v13 }
  0x7a   : >> { %v484_v14 = vsel %vm483_vm10, %v435_v13, %v482_v45  ;;  %v811_v38 = vpop.eup %810 }
  0x7b   : >> { %v487_v31 = vsel %vm485_vm11, %v486_v22, %v484_v14  ;;  %v489_v47 = vmul.f32 %v811_v38, %v436_v24 }
  0x7c   : >> { %v515_v41 = vadd.f32 %v507_v46, %v487_v31 }
  0x7d   : >> { %v491_v49 = vsel %vm490_vm12, %v436_v24, %v489_v47 }
  0x7e   : >> { %525 = vst [vmem:[%s1211_s10 + $0x28] sm:$0xff] %v515_v41  ;;  %v494_v50 = vsel %vm492_vm13, %v493_v35, %v491_v49 }
  0x7f   : >> { %v516_v51 = vadd.f32 %v508_v36, %v494_v50 }
  0x81   : >> { %526 = vst [vmem:[%s1211_s10 + $0x30] sm:$0xff] %v516_v51 }
  0x82   : >> { %v813_v53 = vpop.eup %812 }
  0x83   : >> { %v496_v55 = vmul.f32 %v813_v53, %v437_v43 }
  0x85   : >> { %v498_v57 = vsel %vm497_vm14, %v437_v43, %v496_v55  ;;  %250 = sbr.rel (!%p248_p3) target bundleno = 57 (0x39), region = 102 }
  0x86   : >> { %v501_v1 = vsel %vm499_vm15, %v500_v0, %v498_v57 }
  0x87   : >> { %v517_v58 = vadd.f32 %v509_v56, %v501_v1 }
  0x89   : >> { %527 = vst [vmem:[%s1211_s10 + $0x38] sm:$0xff] %v517_v58 }
  0x8a   : > { %849 = shalt.err (!%p846_p10)
}
  0x8b   : > { %s850_s6 = scalar_lea.hbm %s1301_s5, 2048  ;;  %s854_s20 = scalar_lea.hbm %s1349_s3, 16384 }
  0x8c   : > { %p851_p13 = scmp.ne.s32.totalorder %s1301_s5, %s850_s6  ;;  %p855_p0 = scmp.lt.s32.totalorder %s1301_s5, %s1349_s3 }
  0x8d   : > { %p856_p3 = scmp.lt.s32.totalorder %s854_s20, %s850_s6 }
  0x8e   : > { %p852_p1 = pnand %p851_p13, %p1001_p11 }
  0x8f   : > { %p857_p4 = por %p856_p3, %p855_p0 }
  0x90   : > { %p853_p2 = pneg %p852_p1 }
  0x92   : > { %p858_p5 = pnand %p857_p4, %p853_p2 }
  0x94   : > { %861 = shalt.err (!%p858_p5)
}
  0x95   : > { %s927_s4 = smov 1024   ;;  %s928_s10 = smov 64  }
  0x96   : > { %730 = dma.vmem_to_hbm [thread:$0]  (%p1001_p11), %s1304_s8, 2048, %s1301_s5, %s529_s9, %s927_s4, %s927_s4, %s928_s10  }
  0x97 PF: > { %p747_p6 = scmp.ge.s32.totalorder %s912_s15, 2  ;;  %s558_s17 = sand.u32 1, %s900_s12  }
  0x98   : > { %s559_s27 = scalar_lea.sflag [#allocation4], %s558_s17 }
  0x99   : > { %p740_p7 = pnand %p747_p6, %p1005_p12 }
  0x9b   : > { %p741_p8 = pneg %p740_p7 }
  0x9d   : > { %895 = dma.done.wait (%p741_p8), %s559_s27, 2048  }
  0x9e   : > { %897 = vsyncadd (%p741_p8), %s559_s27, 4294965248  ;;  %p18_p9 = scmp.ge.s32.totalorder %s974_s18, 10   ;;  %s1355_s12 = smov %s904_s13 }
  0x9f   : > { %s1356_s13 = smov %s908_s14  ;;  %s1357_s14 = smov %s986_s21 }
  0xa0   : > { %s1358_s15 = smov %s974_s18  ;;  %20 = sbr.rel (!%p18_p9) target bundleno = 7 (0x7), region = 113 }
  0xa5   :  { %564 = vsyncpa [#allocation3], 1 }
  0xa6   :  { %566 = vsyncpa [#allocation3 + $0x1], 1 }
  0xa7   :  { %567 = vsyncpa [#allocation4], 1 }
  0xa8   :  { %569 = vsyncpa [#allocation4 + $0x1], 1 }
  0xa9   :  { %570 = vsyncpa [#allocation5], 1 }
  0xaa   :  { %572 = vsyncpa [#allocation5 + $0x1], 1 }
  0xab   :  { %573 = vsyncpa [#allocation8], 1 }

</bundles_post_ra>
